<compile_context>
chip_gen: v7x
topology: tpu7x:2x2x1
jax: 0.10.0
libtpu: 0.0.40
codegen_flags: <defaults>
</compile_context>

<pallas_src>
import functools

import jax
import jax.numpy as jnp
from jax.experimental import pallas as pl
from jax.experimental.pallas import tpu as pltpu


def _round_up(x, m):
    return ((x + m - 1) // m) * m


def _gaussianize_kernel(xl_ref, xc_ref, xr_ref, x2_ref, w_ref, b_ref,
                        z2_ref, ld_ref, *, cin, wp, guard, tile_p):
    """Per-tile body (all refs auto-DMA'd to VMEM by BlockSpec).

    xl_ref/xc_ref/xr_ref : (C, GUARD) / (C, TILE_P) / (C, GUARD)
        left halo, tile, right halo of the padded-flat x1 array (C, P).
    x2_ref : (C, TILE_P)   padded-flat x2
    w_ref  : (9, 2C, C)    conv taps (t = dy*3 + dx), exp(lsf) pre-folded;
                           rows [0:C] of each tap -> m, rows [C:2C] -> logs
    b_ref  : (2C, 1)       bias with exp(lsf) pre-folded
    z2_ref : (C, TILE_P)
    ld_ref : (1, TILE_P)   per-pixel (channel-summed) logs
    """
    # Slab with halo: (C, GUARD + TILE_P + GUARD). guard / tile_p are lane
    # multiples, so this concat is plain buffer copies (no lane shuffles).
    slab = jnp.concatenate([xl_ref[...], xc_ref[...], xr_ref[...]], axis=1)

    # Conv as 9 accumulating MXU matmuls straight off lane-shifted slices of
    # the slab (no (9C, TILE_P) im2col buffer, no sublane repacking concat).
    acc = jnp.broadcast_to(b_ref[...], (2 * cin, tile_p)).astype(jnp.float32)
    for t in range(9):
        dy, dx = t // 3, t % 3
        off = guard + (dy - 1) * wp + (dx - 1)
        tap = jax.lax.slice(slab, (0, off), (cin, off + tile_p))
        acc = acc + jnp.dot(w_ref[t], tap, preferred_element_type=jnp.float32)

    m = acc[:cin, :]
    logs = acc[cin:, :]
    z2_ref[...] = ((x2_ref[...] - m) * jnp.exp(-logs)).astype(z2_ref.dtype)
    # Lane-dense logdet partial; interior/sample masking happens in wrapper.
    ld_ref[...] = jnp.sum(logs, axis=0, keepdims=True)


def gaussianize_forward(x1, x2, weight, bias, log_scale_factor, *, tile_p=None):
    """x1, x2: (N, C, H, W) float32 (NCHW, PyTorch convention).

    weight: (2C, C, 3, 3) torch OIHW, bias: (2C,), log_scale_factor: (2C,1,1).
    Returns (z2 (N,C,H,W), logdet (N,)).
    """
    n, c, h, w = x1.shape
    hp, wp = h + 2, w + 2
    hw_pad = hp * wp
    p_total = n * hw_pad                       # padded-flat pixel count

    guard = _round_up(wp + 1, 128)             # halo width, lane-tile multiple

    # ---- generation-aware VMEM budgeting ----------------------------------
    try:
        vmem_cap = int(pltpu.get_tpu_info().vmem_capacity_bytes)
    except Exception:
        vmem_cap = 64 * 1024 * 1024            # conservative (v7x per-TC)
    vmem_limit = int(min(max(vmem_cap // 2, 32 * 1024 * 1024),
                         96 * 1024 * 1024))

    # f32 bytes live per lane-column per grid step: double-buffered I/O
    # (x1 tile, x2, z2, ld) + in-kernel temporaries (slab, 9 taps, acc, ...).
    bytes_per_col = 4 * (22 * c + 2)
    vmem_budget = max(8 * 1024 * 1024, vmem_limit // 3)
    tile_cap = max(guard, (vmem_budget // bytes_per_col) // guard * guard)

    if tile_p is None:
        tile_p = 8192                          # big tiles: ~3% halo re-read
    tile_p = _round_up(tile_p, guard)
    tile_p = min(tile_p, tile_cap)
    tile_p = min(tile_p, _round_up(p_total, guard))   # don't over-pad tiny inputs
    tile_p = max(tile_p, guard)

    num_tiles = -(-p_total // tile_p)
    p_padded = num_tiles * tile_p
    nbg = tile_p // guard
    last_gb = p_padded // guard - 1

    # ---- glue: channel-major padded-flat activations (pixels on lanes) ----
    def to_padded_flat(x):
        xp = jnp.pad(x, ((0, 0), (0, 0), (1, 1), (1, 1)))           # N,C,Hp,Wp
        xf = jnp.transpose(xp, (1, 0, 2, 3)).reshape(c, p_total)    # (C, P)
        return jnp.pad(xf, ((0, 0), (0, p_padded - p_total)))

    x1pf = to_padded_flat(x1).astype(jnp.float32)
    x2pf = to_padded_flat(x2).astype(jnp.float32)

    # ---- glue: fold exp(log_scale_factor) into weights / bias -------------
    lsf = log_scale_factor.reshape(2 * c)
    sm = jnp.exp(lsf[0::2])                    # scale for m channels
    ss = jnp.exp(lsf[1::2])                    # scale for logs channels
    wm = weight[0::2] * sm[:, None, None, None]              # (C, C, 3, 3)
    ws = weight[1::2] * ss[:, None, None, None]
    w_oi = jnp.concatenate([wm, ws], axis=0)                  # (2C, C, 3, 3)
    # torch OIHW -> (dy, dx, o, i) -> (9, 2C, C); tap index t = dy*3 + dx.
    w9 = jnp.transpose(w_oi, (2, 3, 0, 1)).reshape(9, 2 * c, c)
    w9 = w9.astype(jnp.float32)
    b2 = jnp.concatenate([bias[0::2] * sm, bias[1::2] * ss]
                         ).reshape(2 * c, 1).astype(jnp.float32)

    grid_spec = pltpu.PrefetchScalarGridSpec(
        num_scalar_prefetch=0,
        grid=(num_tiles,),
        in_specs=[
            # left halo (clamped at i=0: only feeds discarded pad pixels)
            pl.BlockSpec((c, guard),
                         lambda i: (0, jnp.maximum(i * nbg - 1, 0))),
            # tile body
            pl.BlockSpec((c, tile_p), lambda i: (0, i)),
            # right halo (clamped at the end: only feeds discarded pixels)
            pl.BlockSpec((c, guard),
                         lambda i: (0, jnp.minimum((i + 1) * nbg, last_gb))),
            pl.BlockSpec((c, tile_p), lambda i: (0, i)),
            pl.BlockSpec((9, 2 * c, c), lambda i: (0, 0, 0)),
            pl.BlockSpec((2 * c, 1), lambda i: (0, 0)),
        ],
        out_specs=(
            pl.BlockSpec((c, tile_p), lambda i: (0, i)),
            pl.BlockSpec((1, tile_p), lambda i: (0, i)),
        ),
    )

    kernel = functools.partial(_gaussianize_kernel, cin=c, wp=wp,
                               guard=guard, tile_p=tile_p)

    cost = pl.CostEstimate(
        flops=int(2 * (2 * c) * (9 * c) * p_total + 6 * c * p_total),
        transcendentals=int(c * p_total),
        bytes_accessed=int(4 * ((3 * c + 1) * p_padded + 18 * c * c + 2 * c)),
    )

    z2pf, ld_pf = pl.pallas_call(
        kernel,
        grid_spec=grid_spec,
        out_shape=(
            jax.ShapeDtypeStruct((c, p_padded), x2.dtype),
            jax.ShapeDtypeStruct((1, p_padded), jnp.float32),
        ),
        compiler_params=pltpu.CompilerParams(
            dimension_semantics=("parallel",),
            vmem_limit_bytes=vmem_limit,
        ),
        cost_estimate=cost,
    )(x1pf, x1pf, x1pf, x2pf, w9, b2)

    # ---- glue: unpack back to NCHW / (N,) ----------------------------------
    z2 = z2pf[:, :p_total].reshape(c, n, hp, wp)[:, :, 1:1 + h, 1:1 + w]
    z2 = jnp.transpose(z2, (1, 0, 2, 3))
    ld = ld_pf[0, :p_total].reshape(n, hp, wp)[:, 1:1 + h, 1:1 + w]
    logdet = -jnp.sum(ld, axis=(1, 2))
    return z2, logdet


def reference_forward(x1, x2, weight, bias, log_scale_factor):
    """Plain-JAX reference mirroring the PyTorch module (NCHW)."""
    h = jax.lax.conv_general_dilated(
        x1, weight, window_strides=(1, 1), padding=((1, 1), (1, 1)),
        dimension_numbers=("NCHW", "OIHW", "NCHW"),
        precision=jax.lax.Precision.HIGHEST)
    h = h + bias[None, :, None, None]
    h = h * jnp.exp(log_scale_factor)[None]
    m = h[:, 0::2, :, :]
    logs = h[:, 1::2, :, :]
    z2 = (x2 - m) * jnp.exp(-logs)
    logdet = -jnp.sum(logs, axis=(1, 2, 3))
    return z2, logdet


if __name__ == "__main__":
    key = jax.random.PRNGKey(0)
    N, C, H, W = 2, 4, 16, 16
    k1, k2, k3, k4, k5 = jax.random.split(key, 5)

    x1 = jax.random.normal(k1, (N, C, H, W), jnp.float32)
    x2 = jax.random.normal(k2, (N, C, H, W), jnp.float32)

    # Module __init__ zero-inits the conv; use small deterministic random
    # params instead so the conv hot path is actually exercised.
    weight = jax.random.normal(k3, (2 * C, C, 3, 3), jnp.float32) * 0.05
    bias = jax.random.normal(k4, (2 * C,), jnp.float32) * 0.1
    log_scale_factor = jax.random.normal(k5, (2 * C, 1, 1), jnp.float32) * 0.1

    fwd = jax.jit(gaussianize_forward)
    z2, logdet = fwd(x1, x2, weight, bias, log_scale_factor)
    jax.block_until_ready((z2, logdet))

    z2_ref, logdet_ref = reference_forward(x1, x2, weight, bias,
                                           log_scale_factor)
    assert z2.shape == (N, C, H, W), z2.shape
    assert logdet.shape == (N,), logdet.shape
    assert jnp.allclose(z2, z2_ref, rtol=1e-2, atol=1e-2), "z2 mismatch"
    assert jnp.allclose(logdet, logdet_ref, rtol=1e-2, atol=1e-1), "logdet mismatch"

    print("KERNEL_OK")
</pallas_src>

<mosaic_0001>
module attributes {stable_mosaic.version = 11 : i64} {
  func.func @_gaussianize_kernel(%arg0: i32, %arg1: memref<4x128xf32, #tpu.memory_space<vmem>>, %arg2: memref<4x768xf32, #tpu.memory_space<vmem>>, %arg3: memref<4x128xf32, #tpu.memory_space<vmem>>, %arg4: memref<4x768xf32, #tpu.memory_space<vmem>>, %arg5: memref<9x8x4xf32, #tpu.memory_space<vmem>>, %arg6: memref<8x1xf32, #tpu.memory_space<vmem>>, %arg7: memref<4x768xf32, #tpu.memory_space<vmem>>, %arg8: memref<1x768xf32, #tpu.memory_space<vmem>>) attributes {dimension_semantics = [#tpu.dimension_semantics<parallel>], iteration_bounds = array<i64: 1>, scalar_prefetch = 0 : i64, scratch_operands = 0 : i64, tpu.core_type = #tpu.core_type<tc>, window_params = [{transform_indices = @transform_0, window_bounds = array<i64: 4, 128>}, {transform_indices = @transform_1, window_bounds = array<i64: 4, 768>}, {transform_indices = @transform_2, window_bounds = array<i64: 4, 128>}, {transform_indices = @transform_3, window_bounds = array<i64: 4, 768>}, {pipeline_mode = #tpu.pipeline_mode<synchronous>, transform_indices = @transform_4, window_bounds = array<i64: 9, 8, 4>}, {pipeline_mode = #tpu.pipeline_mode<synchronous>, transform_indices = @transform_5, window_bounds = array<i64: 8, 1>}, {transform_indices = @transform_6, window_bounds = array<i64: 4, 768>}, {transform_indices = @transform_7, window_bounds = array<i64: 1, 768>}]} {
    %c0 = arith.constant 0 : index
    %c0_0 = arith.constant 0 : index
    %0 = vector.load %arg1[%c0, %c0_0] : memref<4x128xf32, #tpu.memory_space<vmem>>, vector<4x128xf32>
    %c0_1 = arith.constant 0 : index
    %c0_2 = arith.constant 0 : index
    %1 = vector.load %arg2[%c0_1, %c0_2] : memref<4x768xf32, #tpu.memory_space<vmem>>, vector<4x768xf32>
    %c0_3 = arith.constant 0 : index
    %c0_4 = arith.constant 0 : index
    %2 = vector.load %arg3[%c0_3, %c0_4] : memref<4x128xf32, #tpu.memory_space<vmem>>, vector<4x128xf32>
    %3 = tpu.concatenate %0, %1, %2 in 1 : vector<4x128xf32>, vector<4x768xf32>, vector<4x128xf32> -> vector<4x1024xf32>
    %c0_5 = arith.constant 0 : index
    %c0_6 = arith.constant 0 : index
    %4 = vector.load %arg6[%c0_5, %c0_6] : memref<8x1xf32, #tpu.memory_space<vmem>>, vector<8x1xf32>
    %5 = vector.shape_cast %4 : vector<8x1xf32> to vector<8x1xf32>
    %6 = vector.broadcast %5 : vector<8x1xf32> to vector<8x768xf32>
    %7 = vector.extract_strided_slice %3 {offsets = [0, 109], sizes = [4, 768], strides = [1, 1]} : vector<4x1024xf32> to vector<4x768xf32>
    %c0_7 = arith.constant 0 : index
    %c0_8 = arith.constant 0 : index
    %c0_9 = arith.constant 0 : index
    %8 = vector.load %arg5[%c0_7, %c0_8, %c0_9] : memref<9x8x4xf32, #tpu.memory_space<vmem>>, vector<1x8x4xf32>
    %9 = vector.shape_cast %8 : vector<1x8x4xf32> to vector<8x4xf32>
    %cst = arith.constant dense<0.000000e+00> : vector<8x768xf32>
    %10 = tpu.matmul %9, %7, %cst {dimension_numbers = #tpu.dot_dimension_numbers<[1], [0], [0], [1], [0, 0, 1, 1], [], []>} : vector<8x4xf32>, vector<4x768xf32>, vector<8x768xf32> -> vector<8x768xf32>
    %11 = arith.addf %6, %10 : vector<8x768xf32>
    %12 = vector.extract_strided_slice %3 {offsets = [0, 110], sizes = [4, 768], strides = [1, 1]} : vector<4x1024xf32> to vector<4x768xf32>
    %c1 = arith.constant 1 : index
    %c0_10 = arith.constant 0 : index
    %c0_11 = arith.constant 0 : index
    %13 = vector.load %arg5[%c1, %c0_10, %c0_11] : memref<9x8x4xf32, #tpu.memory_space<vmem>>, vector<1x8x4xf32>
    %14 = vector.shape_cast %13 : vector<1x8x4xf32> to vector<8x4xf32>
    %cst_12 = arith.constant dense<0.000000e+00> : vector<8x768xf32>
    %15 = tpu.matmul %14, %12, %cst_12 {dimension_numbers = #tpu.dot_dimension_numbers<[1], [0], [0], [1], [0, 0, 1, 1], [], []>} : vector<8x4xf32>, vector<4x768xf32>, vector<8x768xf32> -> vector<8x768xf32>
    %16 = arith.addf %11, %15 : vector<8x768xf32>
    %17 = vector.extract_strided_slice %3 {offsets = [0, 111], sizes = [4, 768], strides = [1, 1]} : vector<4x1024xf32> to vector<4x768xf32>
    %c2 = arith.constant 2 : index
    %c0_13 = arith.constant 0 : index
    %c0_14 = arith.constant 0 : index
    %18 = vector.load %arg5[%c2, %c0_13, %c0_14] : memref<9x8x4xf32, #tpu.memory_space<vmem>>, vector<1x8x4xf32>
    %19 = vector.shape_cast %18 : vector<1x8x4xf32> to vector<8x4xf32>
    %cst_15 = arith.constant dense<0.000000e+00> : vector<8x768xf32>
    %20 = tpu.matmul %19, %17, %cst_15 {dimension_numbers = #tpu.dot_dimension_numbers<[1], [0], [0], [1], [0, 0, 1, 1], [], []>} : vector<8x4xf32>, vector<4x768xf32>, vector<8x768xf32> -> vector<8x768xf32>
    %21 = arith.addf %16, %20 : vector<8x768xf32>
    %22 = vector.extract_strided_slice %3 {offsets = [0, 127], sizes = [4, 768], strides = [1, 1]} : vector<4x1024xf32> to vector<4x768xf32>
    %c3 = arith.constant 3 : index
    %c0_16 = arith.constant 0 : index
    %c0_17 = arith.constant 0 : index
    %23 = vector.load %arg5[%c3, %c0_16, %c0_17] : memref<9x8x4xf32, #tpu.memory_space<vmem>>, vector<1x8x4xf32>
    %24 = vector.shape_cast %23 : vector<1x8x4xf32> to vector<8x4xf32>
    %cst_18 = arith.constant dense<0.000000e+00> : vector<8x768xf32>
    %25 = tpu.matmul %24, %22, %cst_18 {dimension_numbers = #tpu.dot_dimension_numbers<[1], [0], [0], [1], [0, 0, 1, 1], [], []>} : vector<8x4xf32>, vector<4x768xf32>, vector<8x768xf32> -> vector<8x768xf32>
    %26 = arith.addf %21, %25 : vector<8x768xf32>
    %27 = vector.extract_strided_slice %3 {offsets = [0, 128], sizes = [4, 768], strides = [1, 1]} : vector<4x1024xf32> to vector<4x768xf32>
    %c4 = arith.constant 4 : index
    %c0_19 = arith.constant 0 : index
    %c0_20 = arith.constant 0 : index
    %28 = vector.load %arg5[%c4, %c0_19, %c0_20] : memref<9x8x4xf32, #tpu.memory_space<vmem>>, vector<1x8x4xf32>
    %29 = vector.shape_cast %28 : vector<1x8x4xf32> to vector<8x4xf32>
    %cst_21 = arith.constant dense<0.000000e+00> : vector<8x768xf32>
    %30 = tpu.matmul %29, %27, %cst_21 {dimension_numbers = #tpu.dot_dimension_numbers<[1], [0], [0], [1], [0, 0, 1, 1], [], []>} : vector<8x4xf32>, vector<4x768xf32>, vector<8x768xf32> -> vector<8x768xf32>
    %31 = arith.addf %26, %30 : vector<8x768xf32>
    %32 = vector.extract_strided_slice %3 {offsets = [0, 129], sizes = [4, 768], strides = [1, 1]} : vector<4x1024xf32> to vector<4x768xf32>
    %c5 = arith.constant 5 : index
    %c0_22 = arith.constant 0 : index
    %c0_23 = arith.constant 0 : index
    %33 = vector.load %arg5[%c5, %c0_22, %c0_23] : memref<9x8x4xf32, #tpu.memory_space<vmem>>, vector<1x8x4xf32>
    %34 = vector.shape_cast %33 : vector<1x8x4xf32> to vector<8x4xf32>
    %cst_24 = arith.constant dense<0.000000e+00> : vector<8x768xf32>
    %35 = tpu.matmul %34, %32, %cst_24 {dimension_numbers = #tpu.dot_dimension_numbers<[1], [0], [0], [1], [0, 0, 1, 1], [], []>} : vector<8x4xf32>, vector<4x768xf32>, vector<8x768xf32> -> vector<8x768xf32>
    %36 = arith.addf %31, %35 : vector<8x768xf32>
    %37 = vector.extract_strided_slice %3 {offsets = [0, 145], sizes = [4, 768], strides = [1, 1]} : vector<4x1024xf32> to vector<4x768xf32>
    %c6 = arith.constant 6 : index
    %c0_25 = arith.constant 0 : index
    %c0_26 = arith.constant 0 : index
    %38 = vector.load %arg5[%c6, %c0_25, %c0_26] : memref<9x8x4xf32, #tpu.memory_space<vmem>>, vector<1x8x4xf32>
    %39 = vector.shape_cast %38 : vector<1x8x4xf32> to vector<8x4xf32>
    %cst_27 = arith.constant dense<0.000000e+00> : vector<8x768xf32>
    %40 = tpu.matmul %39, %37, %cst_27 {dimension_numbers = #tpu.dot_dimension_numbers<[1], [0], [0], [1], [0, 0, 1, 1], [], []>} : vector<8x4xf32>, vector<4x768xf32>, vector<8x768xf32> -> vector<8x768xf32>
    %41 = arith.addf %36, %40 : vector<8x768xf32>
    %42 = vector.extract_strided_slice %3 {offsets = [0, 146], sizes = [4, 768], strides = [1, 1]} : vector<4x1024xf32> to vector<4x768xf32>
    %c7 = arith.constant 7 : index
    %c0_28 = arith.constant 0 : index
    %c0_29 = arith.constant 0 : index
    %43 = vector.load %arg5[%c7, %c0_28, %c0_29] : memref<9x8x4xf32, #tpu.memory_space<vmem>>, vector<1x8x4xf32>
    %44 = vector.shape_cast %43 : vector<1x8x4xf32> to vector<8x4xf32>
    %cst_30 = arith.constant dense<0.000000e+00> : vector<8x768xf32>
    %45 = tpu.matmul %44, %42, %cst_30 {dimension_numbers = #tpu.dot_dimension_numbers<[1], [0], [0], [1], [0, 0, 1, 1], [], []>} : vector<8x4xf32>, vector<4x768xf32>, vector<8x768xf32> -> vector<8x768xf32>
    %46 = arith.addf %41, %45 : vector<8x768xf32>
    %47 = vector.extract_strided_slice %3 {offsets = [0, 147], sizes = [4, 768], strides = [1, 1]} : vector<4x1024xf32> to vector<4x768xf32>
    %c8 = arith.constant 8 : index
    %c0_31 = arith.constant 0 : index
    %c0_32 = arith.constant 0 : index
    %48 = vector.load %arg5[%c8, %c0_31, %c0_32] : memref<9x8x4xf32, #tpu.memory_space<vmem>>, vector<1x8x4xf32>
    %49 = vector.shape_cast %48 : vector<1x8x4xf32> to vector<8x4xf32>
    %cst_33 = arith.constant dense<0.000000e+00> : vector<8x768xf32>
    %50 = tpu.matmul %49, %47, %cst_33 {dimension_numbers = #tpu.dot_dimension_numbers<[1], [0], [0], [1], [0, 0, 1, 1], [], []>} : vector<8x4xf32>, vector<4x768xf32>, vector<8x768xf32> -> vector<8x768xf32>
    %51 = arith.addf %46, %50 : vector<8x768xf32>
    %52 = vector.extract_strided_slice %51 {offsets = [0, 0], sizes = [4, 768], strides = [1, 1]} : vector<8x768xf32> to vector<4x768xf32>
    %53 = vector.extract_strided_slice %51 {offsets = [4, 0], sizes = [4, 768], strides = [1, 1]} : vector<8x768xf32> to vector<4x768xf32>
    %c0_34 = arith.constant 0 : index
    %c0_35 = arith.constant 0 : index
    %54 = vector.load %arg4[%c0_34, %c0_35] : memref<4x768xf32, #tpu.memory_space<vmem>>, vector<4x768xf32>
    %55 = arith.subf %54, %52 : vector<4x768xf32>
    %cst_36 = arith.constant 0.000000e+00 : f32
    %56 = vector.broadcast %cst_36 : f32 to vector<4x768xf32>
    %57 = arith.subf %56, %53 : vector<4x768xf32>
    %58 = math.exp %57 : vector<4x768xf32>
    %59 = arith.mulf %55, %58 : vector<4x768xf32>
    %c0_37 = arith.constant 0 : index
    %c0_38 = arith.constant 0 : index
    %60 = vector.load %arg7[%c0_37, %c0_38] : memref<4x768xf32, #tpu.memory_space<vmem>>, vector<4x768xf32>
    tpu.vector_store %arg7[%c0_37, %c0_38], %59 {strides = array<i32>} : memref<4x768xf32, #tpu.memory_space<vmem>>, vector<4x768xf32>,
    %cst_39 = arith.constant dense<0.000000e+00> : vector<768xf32>
    %61 = vector.multi_reduction <add>, %53, %cst_39 [0] : vector<4x768xf32> to vector<768xf32>
    %62 = vector.shape_cast %61 : vector<768xf32> to vector<1x768xf32>
    %c0_40 = arith.constant 0 : index
    %c0_41 = arith.constant 0 : index
    %63 = vector.load %arg8[%c0_40, %c0_41] : memref<1x768xf32, #tpu.memory_space<vmem>>, vector<1x768xf32>
    tpu.vector_store %arg8[%c0_40, %c0_41], %62 {strides = array<i32>} : memref<1x768xf32, #tpu.memory_space<vmem>>, vector<1x768xf32>,
    return
  }
  func.func @transform_0(%arg0: i32) -> (i32, i32) {
    %c6_i32 = arith.constant 6 : i32
    %0 = arith.muli %arg0, %c6_i32 : i32
    %c1_i32 = arith.constant 1 : i32
    %1 = arith.subi %0, %c1_i32 : i32
    %c0_i32 = arith.constant 0 : i32
    %2 = arith.maxsi %1, %c0_i32 : i32
    %c0_i32_0 = arith.constant 0 : i32
    %c0_i32_1 = arith.constant 0 : i32
    return %c0_i32_0, %2 : i32, i32
  }
  func.func @transform_1(%arg0: i32) -> (i32, i32) {
    %c0_i32 = arith.constant 0 : i32
    %c0_i32_0 = arith.constant 0 : i32
    return %c0_i32, %arg0 : i32, i32
  }
  func.func @transform_2(%arg0: i32) -> (i32, i32) {
    %c1_i32 = arith.constant 1 : i32
    %0 = arith.addi %arg0, %c1_i32 : i32
    %c6_i32 = arith.constant 6 : i32
    %1 = arith.muli %0, %c6_i32 : i32
    %c5_i32 = arith.constant 5 : i32
    %2 = arith.minsi %1, %c5_i32 : i32
    %c0_i32 = arith.constant 0 : i32
    %c0_i32_0 = arith.constant 0 : i32
    return %c0_i32, %2 : i32, i32
  }
  func.func @transform_3(%arg0: i32) -> (i32, i32) {
    %c0_i32 = arith.constant 0 : i32
    %c0_i32_0 = arith.constant 0 : i32
    return %c0_i32, %arg0 : i32, i32
  }
  func.func @transform_4(%arg0: i32) -> (i32, i32, i32) {
    %c0_i32 = arith.constant 0 : i32
    %c0_i32_0 = arith.constant 0 : i32
    %c0_i32_1 = arith.constant 0 : i32
    %c0_i32_2 = arith.constant 0 : i32
    return %c0_i32, %c0_i32_0, %c0_i32_1 : i32, i32, i32
  }
  func.func @transform_5(%arg0: i32) -> (i32, i32) {
    %c0_i32 = arith.constant 0 : i32
    %c0_i32_0 = arith.constant 0 : i32
    %c0_i32_1 = arith.constant 0 : i32
    return %c0_i32, %c0_i32_0 : i32, i32
  }
  func.func @transform_6(%arg0: i32) -> (i32, i32) {
    %c0_i32 = arith.constant 0 : i32
    %c0_i32_0 = arith.constant 0 : i32
    return %c0_i32, %arg0 : i32, i32
  }
  func.func @transform_7(%arg0: i32) -> (i32, i32) {
    %c0_i32 = arith.constant 0 : i32
    %c0_i32_0 = arith.constant 0 : i32
    return %c0_i32, %arg0 : i32, i32
  }
}

</mosaic_0001>

<bundles_post_ra>
// kernel: squeeze.1
= control target key start
LH: loop header
LB: loop body
LE: loop exit
PB: predicated region body
PF: predicated region fallthrough
CT: control target
= control target key end

     0   :  { %s386_s10 = smov 118   ;;  %s387_s11 = smov 114   ;;  %vm213_vm0 = vcmask 965632   ;;  %vm227_vm1 = vcmask 982016   ;;  %vm241_vm2 = vcmask 998400   ;;  %vm255_vm3 = vcmask 1014784   ;;  %s708_s0 = inlined_call_operand.vmem [shape: f32[648], index: 0, kind: input, shape index: {}]   ;;  %s709_s1 = inlined_call_operand.vmem [shape: f32[2,18,18], index: 1, kind: output, shape index: {}]  }
   0x1   :  { %v278_v0 = vld [vmem:[%s708_s0 + $0x4] sm:$0x1]   ;;  %v282_v1 = vld [vmem:[%s708_s0 + $0x2] sm:$0x1]   ;;  %v280_v2 = vld [vmem:[%s708_s0 + $0x3] sm:$0x1]  }
   0x2   :  { %7 = vrot.lane.b32.xlu0 %v278_v0, %s386_s10  ;;  %21 = vrot.lane.b32.xlu1 %v282_v1, %s387_s11  ;;  %v284_v3 = vld [vmem:[%s708_s0 + $0x1] sm:$0x1]   ;;  %s388_s16 = smov 116   ;;  %s389_s17 = smov 112   ;;  %v33_v4 = vld [vmem:[%s708_s0] sm:$0x1]  }
   0x3   :  { %v287_v5 = vld [vmem:[%s708_s0 + $0x4] sm:$0x1]   ;;  %v333_v7 = vld [vmem:[%s708_s0 + $0x5] sm:$0x1]   ;;  %v336_v8 = vld [vmem:[%s708_s0 + $0x3] sm:$0x1]  }
   0x4   :  { %v332_v6 = vld [vmem:[%s708_s0 + $0x4] sm:$0x1]   ;;  %s390_s30 = smov 110   ;;  %s391_s2 = smov 100   ;;  %v340_v12 = vld [vmem:[%s708_s0 + $0x2] sm:$0x1]  }
   0x5   :  { %v337_v9 = vld [vmem:[%s708_s0 + $0x4] sm:$0x1]   ;;  %v214_v10 = vsel %vm213_vm0, %v333_v7, %v332_v6  ;;  %v341_v13 = vld [vmem:[%s708_s0 + $0x3] sm:$0x1]   ;;  %v344_v14 = vld [vmem:[%s708_s0 + $0x1] sm:$0x1]  }
   0x6   :  { %14 = vrot.lane.b32.xlu0 %v280_v2, %s388_s16  ;;  %28 = vrot.lane.b32.xlu1 %v284_v3, %s389_s17  ;;  %v228_v11 = vsel %vm227_vm1, %v337_v9, %v336_v8  ;;  %v345_v15 = vld [vmem:[%s708_s0 + $0x2] sm:$0x1]   ;;  %s392_s11 = smov 10   ;;  %s393_s12 = smov 8   ;;  %v242_v16 = vsel %vm241_vm2, %v341_v13, %v340_v12  ;;  %v265_v18 = vld [vmem:[%s708_s0] sm:$0x1]  }
   0x7   :  { %v256_v17 = vsel %vm255_vm3, %v345_v15, %v344_v14  ;;  %v348_v19 = vld [vmem:[%s708_s0 + $0x1] sm:$0x1]   ;;  %vm268_vm4 = vcmask 1031168   ;;  %s394_s17 = smov 6   ;;  %s395_s18 = smov 4   ;;  %vm3_vm5 = vcmask 146432  }
   0x8   :  { %v269_v20 = vsel %vm268_vm4, %v348_v19, %v265_v18  ;;  %v289_v21 = vld [vmem:[%s708_s0 + $0x3] sm:$0x1]   ;;  %s396_s21 = smov 2   ;;  %s397_s22 = smov 98   ;;  %v291_v22 = vld [vmem:[%s708_s0 + $0x2] sm:$0x1]  }
   0x9   :  { %v293_v23 = vld [vmem:[%s708_s0 + $0x1] sm:$0x1]   ;;  %s398_s27 = smov 96   ;;  %s399_s28 = smov 94   ;;  %v67_v24 = vld [vmem:[%s708_s0] sm:$0x1]  }
   0xa   :  { %34 = vrot.lane.b32.xlu0 %v33_v4, %s390_s30  ;;  %41 = vrot.lane.b32.xlu1 %v287_v5, %s391_s2  ;;  %v296_v25 = vld [vmem:[%s708_s0 + $0x4] sm:$0x1]   ;;  %s400_s4 = smov 92   ;;  %s401_s5 = smov 82   ;;  %v298_v26 = vld [vmem:[%s708_s0 + $0x3] sm:$0x1]  }
   0xb   :  { %v300_v27 = vld [vmem:[%s708_s0 + $0x2] sm:$0x1]   ;;  %s402_s10 = smov 80   ;;  %v302_v28 = vld [vmem:[%s708_s0 + $0x1] sm:$0x1]   ;;  %s404_s16 = smov 76  }
   0xc   :  { %v101_v29 = vld [vmem:[%s708_s0] sm:$0x1]   ;;  %v305_v30 = vld [vmem:[%s708_s0 + $0x4] sm:$0x1]   ;;  %v307_v31 = vld [vmem:[%s708_s0 + $0x3] sm:$0x1]  }
   0xd   :  { %s407_s23 = smov 62   ;;  %v309_v32 = vld [vmem:[%s708_s0 + $0x2] sm:$0x1]   ;;  %v311_v33 = vld [vmem:[%s708_s0 + $0x1] sm:$0x1]   ;;  %s409_s29 = smov 58  }
   0xe   :  { %215 = vrot.lane.b32.xlu0 %v214_v10, %s392_s11  ;;  %229 = vrot.lane.b32.xlu1 %v228_v11, %s393_s12  ;;  %s403_s11 = smov 78   ;;  %v135_v34 = vld [vmem:[%s708_s0] sm:$0x1]   ;;  %v314_v35 = vld [vmem:[%s708_s0 + $0x4] sm:$0x1]   ;;  %s411_s6 = smov 46  }
   0xf   :  { %v316_v36 = vld [vmem:[%s708_s0 + $0x3] sm:$0x1]   ;;  %v318_v37 = vld [vmem:[%s708_s0 + $0x2] sm:$0x1]   ;;  %s413_s12 = smov 42   ;;  %vm217_vm6 = vcmask 80896  }
  0x10   :  { %v320_v38 = vld [vmem:[%s708_s0 + $0x1] sm:$0x1]   ;;  %v169_v39 = vld [vmem:[%s708_s0] sm:$0x1]   ;;  %v323_v41 = vld [vmem:[%s708_s0 + $0x4] sm:$0x1]  }
  0x11   :  { %v2_v40 = vld [vmem:[%s708_s0] sm:$0x1]   ;;  %v325_v42 = vld [vmem:[%s708_s0 + $0x3] sm:$0x1]   ;;  %v327_v43 = vld [vmem:[%s708_s0 + $0x2] sm:$0x1]  }
  0x12   :  { %243 = vrot.lane.b32.xlu0 %v242_v16, %s394_s17  ;;  %257 = vrot.lane.b32.xlu1 %v256_v17, %s395_s18  ;;  %s405_s17 = smov 74   ;;  %4 = vst.msk [vmem:[%s709_s1] sm:$0x1] %vm3_vm5, %v2_v40   ;;  %v329_v44 = vld [vmem:[%s708_s0 + $0x1] sm:$0x1]   ;;  %vm231_vm7 = vcmask 64512  }
  0x13   :  { %v203_v45 = vld [vmem:[%s708_s0] sm:$0x1]   ;;  %s420_s0 = smov 20   ;;  %vm220_vm8 = vcmask 146512   ;;  %vm234_vm9 = vcmask 146496   ;;  %vm245_vm10 = vcmask 48128  }
  0x14   :  { %vm259_vm11 = vcmask 31744   ;;  %vm248_vm12 = vcmask 146480   ;;  %vm262_vm13 = vcmask 146464   ;;  %vm272_vm14 = vcmask 15360  }
  0x15   :  { %vm275_vm15 = vcmask 146448  }
  0x16   :  { %270 = vrot.lane.b32.xlu0 %v269_v20, %s396_s21  ;;  %48 = vrot.lane.b32.xlu1 %v289_v21, %s397_s22  ;;  %s406_s22 = smov 64   ;;  %s414_s21 = smov 40  }
  0x1a   :  { %55 = vrot.lane.b32.xlu0 %v291_v22, %s398_s27  ;;  %62 = vrot.lane.b32.xlu1 %v293_v23, %s399_s28  ;;  %s408_s28 = smov 60   ;;  %s416_s27 = smov 28  }
  0x1e   :  { %68 = vrot.lane.b32.xlu0 %v67_v24, %s400_s4  ;;  %75 = vrot.lane.b32.xlu1 %v296_v25, %s401_s5  ;;  %s410_s5 = smov 56   ;;  %s418_s4 = smov 24  }
  0x22   :  { %82 = vrot.lane.b32.xlu0 %v298_v26, %s402_s10  ;;  %89 = vrot.lane.b32.xlu1 %v300_v27, %s403_s11  ;;  %s412_s11 = smov 44  }
  0x26   :  { %96 = vrot.lane.b32.xlu0 %v302_v28, %s404_s16  ;;  %102 = vrot.lane.b32.xlu1 %v101_v29, %s405_s17 }
  0x2a   :  { %109 = vrot.lane.b32.xlu0 %v305_v30, %s406_s22  ;;  %116 = vrot.lane.b32.xlu1 %v307_v31, %s407_s23  ;;  %s415_s22 = smov 38  }
  0x2e   :  { %123 = vrot.lane.b32.xlu0 %v309_v32, %s408_s28  ;;  %130 = vrot.lane.b32.xlu1 %v311_v33, %s409_s29  ;;  %s417_s28 = smov 26  }
  0x32   :  { %136 = vrot.lane.b32.xlu0 %v135_v34, %s410_s5  ;;  %143 = vrot.lane.b32.xlu1 %v314_v35, %s411_s6  ;;  %s419_s5 = smov 22  }
  0x36   :  { %150 = vrot.lane.b32.xlu0 %v316_v36, %s412_s11  ;;  %157 = vrot.lane.b32.xlu1 %v318_v37, %s413_s12 }
  0x3a   :  { %164 = vrot.lane.b32.xlu0 %v320_v38, %s414_s21  ;;  %170 = vrot.lane.b32.xlu1 %v169_v39, %s415_s22 }
  0x3e   :  { %177 = vrot.lane.b32.xlu0 %v323_v41, %s416_s27  ;;  %184 = vrot.lane.b32.xlu1 %v325_v42, %s417_s28 }
  0x42   :  { %191 = vrot.lane.b32.xlu0 %v327_v43, %s418_s4  ;;  %198 = vrot.lane.b32.xlu1 %v329_v44, %s419_s5 }
  0x46   :  { %204 = vrot.lane.b32.xlu0 %v203_v45, %s420_s0 }
  0x74   :  { %v8_v46 = vpop.permute.xlu0 %7   ;;  %v22_v47 = vpop.permute.xlu1 %21  }
  0x75   :  { %279 = vst.msk [vmem:[%s709_s1 + $0x23] sm:$0x1] %vm3_vm5, %v8_v46   ;;  %283 = vst.msk [vmem:[%s709_s1 + $0xf] sm:$0x1] %vm3_vm5, %v22_v47  }
  0x78   :  { %v15_v48 = vpop.permute.xlu0 %14   ;;  %v29_v49 = vpop.permute.xlu1 %28  }
  0x79   :  { %281 = vst.msk [vmem:[%s709_s1 + $0x1c] sm:$0x1] %vm3_vm5, %v15_v48   ;;  %285 = vst.msk [vmem:[%s709_s1 + $0x8] sm:$0x1] %vm3_vm5, %v29_v49  }
  0x7c   :  { %v35_v50 = vpop.permute.xlu0 %34   ;;  %v42_v51 = vpop.permute.xlu1 %41  }
  0x7d   :  { %286 = vst.msk [vmem:[%s709_s1 + $0x1] sm:$0x1] %vm3_vm5, %v35_v50   ;;  %288 = vst.msk [vmem:[%s709_s1 + $0x24] sm:$0x1] %vm3_vm5, %v42_v51  }
  0x80   :  { %v216_v52 = vpop.permute.xlu0 %215   ;;  %v230_v53 = vpop.permute.xlu1 %229  }
  0x81   :  { %334 = vst.msk [vmem:[%s709_s1 + $0x29] sm:$0x1] %vm217_vm6, %v216_v52  }
  0x82   :  { %338 = vst.msk [vmem:[%s709_s1 + $0x22] sm:$0x1] %vm231_vm7, %v230_v53  }
  0x83   :  { %335 = vst.msk [vmem:[%s709_s1 + $0x29] sm:$0x1] %vm220_vm8, %v216_v52  }
  0x84   :  { %339 = vst.msk [vmem:[%s709_s1 + $0x22] sm:$0x1] %vm234_vm9, %v230_v53   ;;  %v244_v54 = vpop.permute.xlu0 %243   ;;  %v258_v55 = vpop.permute.xlu1 %257  }
  0x85   :  { %342 = vst.msk [vmem:[%s709_s1 + $0x1b] sm:$0x1] %vm245_vm10, %v244_v54  }
  0x86   :  { %346 = vst.msk [vmem:[%s709_s1 + $0xe] sm:$0x1] %vm259_vm11, %v258_v55  }
  0x87   :  { %343 = vst.msk [vmem:[%s709_s1 + $0x1b] sm:$0x1] %vm248_vm12, %v244_v54  }
  0x88   :  { %347 = vst.msk [vmem:[%s709_s1 + $0xe] sm:$0x1] %vm262_vm13, %v258_v55   ;;  %v271_v56 = vpop.permute.xlu0 %270   ;;  %v49_v57 = vpop.permute.xlu1 %48  }
  0x89   :  { %349 = vst.msk [vmem:[%s709_s1 + $0x7] sm:$0x1] %vm272_vm14, %v271_v56  }
  0x8a   :  { %290 = vst.msk [vmem:[%s709_s1 + $0x1d] sm:$0x1] %vm3_vm5, %v49_v57  }
  0x8b   :  { %350 = vst.msk [vmem:[%s709_s1 + $0x7] sm:$0x1] %vm275_vm15, %v271_v56  }
  0x8c   :  { %v56_v58 = vpop.permute.xlu0 %55   ;;  %v63_v59 = vpop.permute.xlu1 %62  }
  0x8d   :  { %292 = vst.msk [vmem:[%s709_s1 + $0x10] sm:$0x1] %vm3_vm5, %v56_v58   ;;  %294 = vst.msk [vmem:[%s709_s1 + $0x9] sm:$0x1] %vm3_vm5, %v63_v59  }
  0x90   :  { %v69_v60 = vpop.permute.xlu0 %68   ;;  %v76_v61 = vpop.permute.xlu1 %75  }
  0x91   :  { %295 = vst.msk [vmem:[%s709_s1 + $0x2] sm:$0x1] %vm3_vm5, %v69_v60   ;;  %297 = vst.msk [vmem:[%s709_s1 + $0x25] sm:$0x1] %vm3_vm5, %v76_v61  }
  0x94   :  { %v83_v62 = vpop.permute.xlu0 %82   ;;  %v90_v63 = vpop.permute.xlu1 %89  }
  0x95   :  { %299 = vst.msk [vmem:[%s709_s1 + $0x1e] sm:$0x1] %vm3_vm5, %v83_v62   ;;  %301 = vst.msk [vmem:[%s709_s1 + $0x11] sm:$0x1] %vm3_vm5, %v90_v63  }
  0x98   :  { %v97_v0 = vpop.permute.xlu0 %96   ;;  %v103_v1 = vpop.permute.xlu1 %102  }
  0x99   :  { %303 = vst.msk [vmem:[%s709_s1 + $0xa] sm:$0x1] %vm3_vm5, %v97_v0   ;;  %304 = vst.msk [vmem:[%s709_s1 + $0x3] sm:$0x1] %vm3_vm5, %v103_v1  }
  0x9c   :  { %v110_v2 = vpop.permute.xlu0 %109   ;;  %v117_v3 = vpop.permute.xlu1 %116  }
  0x9d   :  { %306 = vst.msk [vmem:[%s709_s1 + $0x26] sm:$0x1] %vm3_vm5, %v110_v2   ;;  %308 = vst.msk [vmem:[%s709_s1 + $0x1f] sm:$0x1] %vm3_vm5, %v117_v3  }
  0xa0   :  { %v124_v4 = vpop.permute.xlu0 %123   ;;  %v131_v5 = vpop.permute.xlu1 %130  }
  0xa1   :  { %310 = vst.msk [vmem:[%s709_s1 + $0x18] sm:$0x1] %vm3_vm5, %v124_v4   ;;  %312 = vst.msk [vmem:[%s709_s1 + $0xb] sm:$0x1] %vm3_vm5, %v131_v5  }
  0xa4   :  { %v137_v6 = vpop.permute.xlu0 %136   ;;  %v144_v7 = vpop.permute.xlu1 %143  }
  0xa5   :  { %313 = vst.msk [vmem:[%s709_s1 + $0x4] sm:$0x1] %vm3_vm5, %v137_v6   ;;  %315 = vst.msk [vmem:[%s709_s1 + $0x27] sm:$0x1] %vm3_vm5, %v144_v7  }
  0xa8   :  { %v151_v8 = vpop.permute.xlu0 %150   ;;  %v158_v9 = vpop.permute.xlu1 %157  }
  0xa9   :  { %317 = vst.msk [vmem:[%s709_s1 + $0x20] sm:$0x1] %vm3_vm5, %v151_v8   ;;  %319 = vst.msk [vmem:[%s709_s1 + $0x19] sm:$0x1] %vm3_vm5, %v158_v9  }
  0xac   :  { %v165_v10 = vpop.permute.xlu0 %164   ;;  %v171_v11 = vpop.permute.xlu1 %170  }
  0xad   :  { %321 = vst.msk [vmem:[%s709_s1 + $0xc] sm:$0x1] %vm3_vm5, %v165_v10   ;;  %322 = vst.msk [vmem:[%s709_s1 + $0x5] sm:$0x1] %vm3_vm5, %v171_v11  }
  0xb0   :  { %v178_v12 = vpop.permute.xlu0 %177   ;;  %v185_v13 = vpop.permute.xlu1 %184  }
  0xb1   :  { %324 = vst.msk [vmem:[%s709_s1 + $0x28] sm:$0x1] %vm3_vm5, %v178_v12   ;;  %326 = vst.msk [vmem:[%s709_s1 + $0x21] sm:$0x1] %vm3_vm5, %v185_v13  }
  0xb4   :  { %v192_v14 = vpop.permute.xlu0 %191   ;;  %v199_v15 = vpop.permute.xlu1 %198  }
  0xb5   :  { %328 = vst.msk [vmem:[%s709_s1 + $0x1a] sm:$0x1] %vm3_vm5, %v192_v14   ;;  %330 = vst.msk [vmem:[%s709_s1 + $0xd] sm:$0x1] %vm3_vm5, %v199_v15  }
  0xb8   :  { %v205_v16 = vpop.permute.xlu0 %204  }
  0xb9   :  { %331 = vst.msk [vmem:[%s709_s1 + $0x6] sm:$0x1] %vm3_vm5, %v205_v16  }

// kernel: neg.1
= control target key start
LH: loop header
LB: loop body
LE: loop exit
PB: predicated region body
PF: predicated region fallthrough
CT: control target
= control target key end

     0   :  { %2 = vsyncpa [#allocation1], 0  ;;  %s70_s0 = inlined_call_operand.vmem [shape: f32[2], index: 0, kind: input, shape index: {}]   ;;  %s71_s1 = inlined_call_operand.hbm [shape: f32[2], index: 1, kind: output, shape index: {}]  }
   0x1   :  { %v3_v0 = vld [vmem:[%s70_s0] sm:$0x1]  ;;  %s44_s0 = smov [#allocation0]  }
   0x2   :  { %v6_v1 = vxor.u32 2147483648, %v3_v0  ;;  %s13_s8 = sshll.u32 %s44_s0, 4  ;;  %s14_s8 = int_to_ptr.vmem [resolvable:$true] %s13_s8 }
   0x3   :  { %s20_s9 = scalar_lea.vmem %s14_s8, 16  ;;  %s24_s10 = scalar_lea.vmem %s14_s8, 32 }
   0x4   :  { %8 = vst [vmem:[#allocation0] sm:$0x1] %v6_v1  ;;  %p21_p0 = scmp.ne.s32.totalorder %s14_s8, %s20_s9  ;;  %p25_p1 = scmp.lt.s32.totalorder %s14_s8, %s14_s8 }
   0x5   :  { %p26_p2 = scmp.lt.s32.totalorder %s24_s10, %s20_s9 }
   0x7   :  { %p27_p3 = por %p26_p2, %p25_p1 }
   0x9   :  { %p28_p4 = pnand %p27_p3, %p21_p0 }
   0xb   :  { %31 = shalt.err (!%p28_p4)
}
   0xc   :  { %s32_s13 = scalar_lea.hbm %s71_s1, 16 }
   0xd   :  { %p33_p5 = scmp.ne.s32.totalorder %s71_s1, %s32_s13  ;;  %p36_p6 = scmp.lt.u32.totalorder %s32_s13, %s71_s1 }
   0xf   :  { %p38_p7 = pnand %p36_p6, %p33_p5 }
  0x11   :  { %41 = shalt.err (!%p38_p7)
}
  0x12   :  { %16 = dma.vmem_to_hbm [thread:$0]  %s14_s8, 16, %s71_s1, [#allocation1]  }
  0x13   :  { %42 = dma.done.wait [#allocation1], 16  }
  0x14   :  { %43 = vsyncadd [#allocation1], 4294967280 }
  0x15   :  { %18 = vsyncpa [#allocation1], 1 }

// kernel: gaussianize_forward.1
= control target key start
LH: loop header
LB: loop body
LE: loop exit
PB: predicated region body
PF: predicated region fallthrough
CT: control target
= control target key end

     0   :  { %v2752_v2 = vmov 0.0   ;;  %s2753_s28 = smov 19   ;;  %s2754_s9 = smov 18   ;;  %v2761_v9 = vmov 0   ;;  %vm122_vm0 = vcmask 154624   ;;  %vm133_vm1 = vcmask 1043456   ;;  %s3136_s1 = inlined_call_operand.vmem [shape: f32[4,768], index: 1, kind: input, shape index: {}, may-alias: {0,1,2}]   ;;  %s3137_s0 = inlined_call_operand.vmem [shape: f32[4,768], index: 0, kind: input, shape index: {}, may-alias: {0,1,2}]   ;;  %s3138_s2 = inlined_call_operand.vmem [shape: f32[4,768], index: 2, kind: input, shape index: {}, may-alias: {0,1,2}]   ;;  %s3139_s5 = inlined_call_operand.vmem [shape: f32[8,1], index: 5, kind: input, shape index: {}]   ;;  %s3140_s4 = inlined_call_operand.vmem [shape: f32[9,8,4], index: 4, kind: input, shape index: {}]   ;;  %s3141_s3 = inlined_call_operand.vmem [shape: f32[4,768], index: 3, kind: input, shape index: {}]   ;;  %s3142_s6 = inlined_call_operand.vmem [shape: f32[4,768], index: 6, kind: output, shape index: {0}]   ;;  %s3143_s7 = inlined_call_operand.vmem [shape: f32[1,768], index: 7, kind: output, shape index: {1}]  }
   0x1   :  { %v2806_v0 = vld [vmem:[%s3136_s1] sm:$0xff]  ;;  %210 = vmatprep.mubr.f32.mxu1 %v2752_v2  ;;  %724 = vmatprep.mubr.f32.mxu0 %v2752_v2  ;;  %v2821_v4 = vld [vmem:[%s3136_s1 + $0x8] sm:$0xff]  ;;  %v2832_v6 = vld [vmem:[%s3136_s1 + $0x10] sm:$0xff]  ;;  %s2755_s1 = smov 17   ;;  %s2756_s10 = smov 1   ;;  %vm129_vm2 = vcmask 31744  }
   0x2   :  { %v89_v1 = vld [vmem:[%s3137_s0] sm:$0xf]  ;;  %110 = vrot.lane.b32.xlu0 %v2806_v0, %s2753_s28  ;;  %v2816_v3 = vcombine.high %v2806_v0, %v2806_v0  ;;  %v2827_v5 = vcombine.high %v2821_v4, %v2821_v4  ;;  %v2838_v7 = vcombine.high %v2832_v6, %v2832_v6  ;;  %s2757_s11 = smov 127   ;;  %v2581_v8 = vld [vmem:[%s3138_s2 + $0x14] sm:$0xf]  ;;  %s2758_s14 = smov 111  }
   0x3   :  { %108 = vrot.lane.b32.xlu1 %v89_v1, %s2753_s28  ;;  %s2759_s15 = smov 110   ;;  %s2760_s2 = smov 109   ;;  %2736 = vset.pattern.permute.xlu0 %v2761_v9  ;;  %v100_v10 = vld [vmem:[%s3139_s5] sm:$0xff]  ;;  %vm381_vm3 = vcmask 146432   ;;  %v2591_v30 = vld [vmem:[%s3140_s4 + $0x8] sm:$0xff]  ;;  %vm638_vm4 = vcmask 138240  }
   0x4   :  { %v106_v16 = vld [vmem:[%s3140_s4] sm:$0xff]  ;;  %v2601_v44 = vld [vmem:[%s3140_s4 + $0x10] sm:$0xff]  ;;  %vm895_vm5 = vcmask 7168   ;;  %v2611_v58 = vld [vmem:[%s3140_s4 + $0x18] sm:$0xff]  ;;  %vm1389_vm6 = vcmask 1039360   ;;  %vm1646_vm7 = vcmask 908288  }
   0x5   :  { %vm1903_vm8 = vcmask 900096   ;;  %vm2160_vm9 = vcmask 891904  }
   0x6   :  { %112 = vrot.lane.b32.xlu0 %v2816_v3, %s2753_s28 }
   0x7   :  { %114 = vrot.lane.b32.xlu1 %v2821_v4, %s2753_s28 }
   0xa   :  { %116 = vrot.lane.b32.xlu0 %v2827_v5, %s2753_s28 }
   0xb   :  { %118 = vrot.lane.b32.xlu1 %v2832_v6, %s2753_s28 }
   0xe   :  { %120 = vrot.lane.b32.xlu0 %v2838_v7, %s2753_s28 }
   0xf   :  { %369 = vrot.lane.b32.xlu1 %v2806_v0, %s2754_s9 }
  0x12   :  { %371 = vrot.lane.b32.xlu0 %v2816_v3, %s2754_s9 }
  0x13   :  { %367 = vrot.lane.b32.xlu1 %v89_v1, %s2754_s9 }
  0x16   :  { %373 = vrot.lane.b32.xlu0 %v2821_v4, %s2754_s9 }
  0x17   :  { %375 = vrot.lane.b32.xlu1 %v2827_v5, %s2754_s9 }
  0x1a   :  { %377 = vrot.lane.b32.xlu0 %v2832_v6, %s2754_s9 }
  0x1b   :  { %379 = vrot.lane.b32.xlu1 %v2838_v7, %s2754_s9 }
  0x1e   :  { %626 = vrot.lane.b32.xlu0 %v2806_v0, %s2755_s1 }
  0x1f   :  { %628 = vrot.lane.b32.xlu1 %v2816_v3, %s2755_s1 }
  0x22   :  { %624 = vrot.lane.b32.xlu0 %v89_v1, %s2755_s1 }
  0x23   :  { %630 = vrot.lane.b32.xlu1 %v2821_v4, %s2755_s1 }
  0x26   :  { %632 = vrot.lane.b32.xlu0 %v2827_v5, %s2755_s1 }
  0x27   :  { %634 = vrot.lane.b32.xlu1 %v2832_v6, %s2755_s1 }
  0x2a   :  { %636 = vrot.lane.b32.xlu0 %v2838_v7, %s2755_s1 }
  0x2b   :  { %883 = vrot.lane.b32.xlu1 %v2806_v0, %s2756_s10 }
  0x2e   :  { %885 = vrot.lane.b32.xlu0 %v2816_v3, %s2756_s10 }
  0x2f   :  { %881 = vrot.lane.b32.xlu1 %v89_v1, %s2756_s10 }
  0x32   :  { %887 = vrot.lane.b32.xlu0 %v2821_v4, %s2756_s10 }
  0x33   :  { %889 = vrot.lane.b32.xlu1 %v2827_v5, %s2756_s10 }
  0x36   :  { %891 = vrot.lane.b32.xlu0 %v2832_v6, %s2756_s10 }
  0x37   :  { %893 = vrot.lane.b32.xlu1 %v2838_v7, %s2756_s10 }
  0x3a   :  { %1377 = vrot.lane.b32.xlu0 %v2816_v3, %s2757_s11 }
  0x3b   :  { %1379 = vrot.lane.b32.xlu1 %v2821_v4, %s2757_s11 }
  0x3e   :  { %1375 = vrot.lane.b32.xlu0 %v2806_v0, %s2757_s11 }
  0x3f   :  { %1381 = vrot.lane.b32.xlu1 %v2827_v5, %s2757_s11 }
  0x42   :  { %1383 = vrot.lane.b32.xlu0 %v2832_v6, %s2757_s11 }
  0x43   :  { %1385 = vrot.lane.b32.xlu1 %v2838_v7, %s2757_s11 }
  0x46   :  { %1387 = vrot.lane.b32.xlu0 %v2581_v8, %s2757_s11 }
  0x47   :  { %1634 = vrot.lane.b32.xlu1 %v2816_v3, %s2758_s14 }
  0x4a   :  { %1636 = vrot.lane.b32.xlu0 %v2821_v4, %s2758_s14 }
  0x4b   :  { %1632 = vrot.lane.b32.xlu1 %v2806_v0, %s2758_s14 }
  0x4e   :  { %1638 = vrot.lane.b32.xlu0 %v2827_v5, %s2758_s14 }
  0x4f   :  { %1640 = vrot.lane.b32.xlu1 %v2832_v6, %s2758_s14 }
  0x52   :  { %1642 = vrot.lane.b32.xlu0 %v2838_v7, %s2758_s14 }
  0x53   :  { %1644 = vrot.lane.b32.xlu1 %v2581_v8, %s2758_s14 }
  0x56   :  { %1891 = vrot.lane.b32.xlu0 %v2816_v3, %s2759_s15 }
  0x57   :  { %1893 = vrot.lane.b32.xlu1 %v2821_v4, %s2759_s15 }
  0x5a   :  { %1889 = vrot.lane.b32.xlu0 %v2806_v0, %s2759_s15 }
  0x5b   :  { %1895 = vrot.lane.b32.xlu1 %v2827_v5, %s2759_s15 }
  0x5e   :  { %1897 = vrot.lane.b32.xlu0 %v2832_v6, %s2759_s15 }
  0x5f   :  { %1899 = vrot.lane.b32.xlu1 %v2838_v7, %s2759_s15 }
  0x62   :  { %1901 = vrot.lane.b32.xlu0 %v2581_v8, %s2759_s15 }
  0x63   :  { %2148 = vrot.lane.b32.xlu1 %v2816_v3, %s2760_s2 }
  0x66   :  { %2150 = vrot.lane.b32.xlu0 %v2821_v4, %s2760_s2 }
  0x67   :  { %2146 = vrot.lane.b32.xlu1 %v2806_v0, %s2760_s2 }
  0x6a   :  { %2152 = vrot.lane.b32.xlu0 %v2827_v5, %s2760_s2 }
  0x6b   :  { %2154 = vrot.lane.b32.xlu1 %v2832_v6, %s2760_s2 }
  0x6e   :  { %2156 = vrot.lane.b32.xlu0 %v2838_v7, %s2760_s2 }
  0x6f   :  { %2158 = vrot.lane.b32.xlu1 %v2581_v8, %s2760_s2 }
  0x72   :  { %103 = vperm.xlu0 %2736, %v100_v10  }
  0x74   :  { %v111_v11 = vpop.permute.xlu0 %110 }
  0x75   :  { %v109_v12 = vpop.permute.xlu1 %108 }
  0x76   :  { %v123_v17 = vsel %vm122_vm0, %v109_v12, %v111_v11 }
  0x78   :  { %v113_v13 = vpop.permute.xlu0 %112 }
  0x79   :  { %v115_v14 = vpop.permute.xlu1 %114  ;;  %v124_v15 = vsel %vm122_vm0, %v111_v11, %v113_v13 }
  0x7a   :  { %2582 = vmatprep.subr.msk.mxu1 %vm133_vm1, %v124_v15  ;;  %v125_v21 = vsel %vm122_vm0, %v113_v13, %v115_v14 }
  0x7b   :  { %2583 = vmatpush1.msk.msra.mxu1 %vm133_vm1, %v123_v17 }
  0x7c   :  { %v117_v18 = vpop.permute.xlu0 %116  ;;  %2584 = vmatmul.mubr.msk.f32.vlgmr.msra.gmra.mrb[0].mxu1 %vm129_vm2, %v106_v16 }
  0x7d   :  { %v119_v19 = vpop.permute.xlu1 %118  ;;  %v126_v20 = vsel %vm122_vm0, %v115_v14, %v117_v18  ;;  %281 = vmatprep.mubr.f32.mxu1 %v2752_v2 }
  0x7e   :  { %2585 = vmatprep.subr.msk.mxu1 %vm133_vm1, %v126_v20  ;;  %v127_v25 = vsel %vm122_vm0, %v117_v18, %v119_v19 }
  0x7f   :  { %2586 = vmatpush1.msk.msra.mxu1 %vm133_vm1, %v125_v21 }
  0x80   :  { %v121_v22 = vpop.permute.xlu0 %120  ;;  %2587 = vmatmul.mubr.msk.f32.vlgmr.msra.gmra.mrb[2].mxu1 %vm129_vm2, %v106_v16 }
  0x81   :  { %v370_v23 = vpop.permute.xlu1 %369  ;;  %v128_v24 = vsel %vm122_vm0, %v119_v19, %v121_v22  ;;  %352 = vmatprep.mubr.f32.mxu1 %v2752_v2 }
  0x82   :  { %2588 = vmatprep.subr.msk.mxu1 %vm133_vm1, %v128_v24  ;;  %v2641_v24 = vld [vmem:[%s3140_s4 + $0x30] sm:$0xff] }
  0x83   :  { %2589 = vmatpush1.msk.msra.mxu1 %vm133_vm1, %v127_v25 }
  0x84   :  { %v372_v26 = vpop.permute.xlu0 %371  ;;  %2590 = vmatmul.mubr.msk.f32.vlgmr.msra.gmra.mrb[4].mxu1 %vm129_vm2, %v106_v16 }
  0x85   :  { %v368_v27 = vpop.permute.xlu1 %367  ;;  %v383_v28 = vsel %vm381_vm3, %v370_v23, %v372_v26  ;;  %467 = vmatprep.mubr.f32.mxu1 %v2752_v2 }
  0x86   :  { %v382_v29 = vsel %vm381_vm3, %v368_v27, %v370_v23  ;;  %2592 = vmatprep.subr.msk.mxu1 %vm133_vm1, %v383_v28 }
  0x87   :  { %2593 = vmatpush1.msk.msra.mxu1 %vm133_vm1, %v382_v29 }
  0x88   :  { %v374_v31 = vpop.permute.xlu0 %373  ;;  %2594 = vmatmul.mubr.msk.f32.vlgmr.msra.gmra.mrb[0].mxu1 %vm129_vm2, %v2591_v30 }
  0x89   :  { %v376_v32 = vpop.permute.xlu1 %375  ;;  %v384_v33 = vsel %vm381_vm3, %v372_v26, %v374_v31  ;;  %538 = vmatprep.mubr.f32.mxu1 %v2752_v2 }
  0x8a   :  { %v385_v34 = vsel %vm381_vm3, %v374_v31, %v376_v32 }
  0x8b   :  { %2595 = vmatprep.subr.msk.mxu1 %vm133_vm1, %v385_v34 }
  0x8c   :  { %2596 = vmatpush1.msk.msra.mxu1 %vm133_vm1, %v384_v33  ;;  %v378_v35 = vpop.permute.xlu0 %377 }
  0x8d   :  { %v380_v36 = vpop.permute.xlu1 %379  ;;  %2597 = vmatmul.mubr.msk.f32.vlgmr.msra.gmra.mrb[2].mxu1 %vm129_vm2, %v2591_v30  ;;  %v386_v37 = vsel %vm381_vm3, %v376_v32, %v378_v35 }
  0x8e   :  { %v387_v38 = vsel %vm381_vm3, %v378_v35, %v380_v36  ;;  %609 = vmatprep.mubr.f32.mxu1 %v2752_v2 }
  0x8f   :  { %2598 = vmatprep.subr.msk.mxu1 %vm133_vm1, %v387_v38  ;;  %v2651_v38 = vld [vmem:[%s3140_s4 + $0x38] sm:$0xff] }
  0x90   :  { %2599 = vmatpush1.msk.msra.mxu1 %vm133_vm1, %v386_v37  ;;  %v627_v39 = vpop.permute.xlu0 %626 }
  0x91   :  { %v629_v40 = vpop.permute.xlu1 %628  ;;  %2600 = vmatmul.mubr.msk.f32.vlgmr.msra.gmra.mrb[4].mxu1 %vm129_vm2, %v2591_v30 }
  0x92   :  { %v640_v41 = vsel %vm638_vm4, %v627_v39, %v629_v40  ;;  %795 = vmatprep.mubr.f32.mxu1 %v2752_v2 }
  0x93   :  { %2602 = vmatprep.subr.msk.mxu0 %vm133_vm1, %v640_v41 }
  0x94   :  { %v625_v42 = vpop.permute.xlu0 %624 }
  0x95   :  { %v631_v43 = vpop.permute.xlu1 %630  ;;  %v639_v45 = vsel %vm638_vm4, %v625_v42, %v627_v39 }
  0x96   :  { %2603 = vmatpush1.msk.msra.mxu0 %vm133_vm1, %v639_v45  ;;  %v641_v49 = vsel %vm638_vm4, %v629_v40, %v631_v43 }
  0x97   :  { %2604 = vmatmul.mubr.msk.f32.vlgmr.msra.gmra.mrb[0].mxu0 %vm129_vm2, %v2601_v44 }
  0x98   :  { %v633_v46 = vpop.permute.xlu0 %632  ;;  %866 = vmatprep.mubr.f32.mxu0 %v2752_v2 }
  0x99   :  { %v635_v47 = vpop.permute.xlu1 %634  ;;  %v642_v48 = vsel %vm638_vm4, %v631_v43, %v633_v46 }
  0x9a   :  { %2605 = vmatprep.subr.msk.mxu1 %vm133_vm1, %v642_v48  ;;  %v643_v53 = vsel %vm638_vm4, %v633_v46, %v635_v47 }
  0x9b   :  { %2606 = vmatpush1.msk.msra.mxu1 %vm133_vm1, %v641_v49 }
  0x9c   :  { %v637_v50 = vpop.permute.xlu0 %636  ;;  %2607 = vmatmul.mubr.msk.f32.vlgmr.msra.gmra.mrb[2].mxu1 %vm129_vm2, %v2601_v44 }
  0x9d   :  { %v884_v51 = vpop.permute.xlu1 %883  ;;  %v644_v52 = vsel %vm638_vm4, %v635_v47, %v637_v50  ;;  %1052 = vmatprep.mubr.f32.mxu1 %v2752_v2 }
  0x9e   :  { %2608 = vmatprep.subr.msk.mxu0 %vm133_vm1, %v644_v52  ;;  %v2661_v52 = vld [vmem:[%s3140_s4 + $0x40] sm:$0xff] }
  0x9f   :  { %2609 = vmatpush1.msk.msra.mxu0 %vm133_vm1, %v643_v53 }
  0xa0   :  { %v886_v54 = vpop.permute.xlu0 %885  ;;  %2610 = vmatmul.mubr.msk.f32.vlgmr.msra.gmra.mrb[2].mxu0 %vm129_vm2, %v2601_v44 }
  0xa1   :  { %v882_v55 = vpop.permute.xlu1 %881  ;;  %v897_v56 = vsel %vm895_vm5, %v884_v51, %v886_v54  ;;  %981 = vmatprep.mubr.f32.mxu0 %v2752_v2 }
  0xa2   :  { %v896_v57 = vsel %vm895_vm5, %v882_v55, %v884_v51  ;;  %2612 = vmatprep.subr.msk.mxu0 %vm133_vm1, %v897_v56 }
  0xa3   :  { %2613 = vmatpush1.msk.msra.mxu0 %vm133_vm1, %v896_v57 }
  0xa4   :  { %v888_v59 = vpop.permute.xlu0 %887  ;;  %2614 = vmatmul.mubr.msk.f32.vlgmr.msra.gmra.mrb[0].mxu0 %vm129_vm2, %v2611_v58 }
  0xa5   :  { %v890_v60 = vpop.permute.xlu1 %889  ;;  %v898_v61 = vsel %vm895_vm5, %v886_v54, %v888_v59  ;;  %1123 = vmatprep.mubr.f32.mxu0 %v2752_v2 }
  0xa6   :  { %v899_v62 = vsel %vm895_vm5, %v888_v59, %v890_v60 }
  0xa7   :  { %2615 = vmatprep.subr.msk.mxu1 %vm133_vm1, %v899_v62 }
  0xa8   :  { %2616 = vmatpush1.msk.msra.mxu1 %vm133_vm1, %v898_v61  ;;  %v892_v63 = vpop.permute.xlu0 %891 }
  0xa9   :  { %v894_v1 = vpop.permute.xlu1 %893  ;;  %2617 = vmatmul.mubr.msk.f32.vlgmr.msra.gmra.mrb[2].mxu1 %vm129_vm2, %v2611_v58  ;;  %2625 = vmatprep.subr.msk.mxu1 %vm133_vm1, %v2827_v5  ;;  %v900_v8 = vsel %vm895_vm5, %v890_v60, %v892_v63 }
  0xaa   :  { %v901_v9 = vsel %vm895_vm5, %v892_v63, %v894_v1  ;;  %2626 = vmatpush1.msk.msra.mxu1 %vm133_vm1, %v2821_v4  ;;  %1288 = vmatprep.mubr.f32.mxu1 %v2752_v2  ;;  %v2621_v4 = vld [vmem:[%s3140_s4 + $0x20] sm:$0xff] }
  0xab   :  { %2618 = vmatprep.subr.msk.mxu0 %vm133_vm1, %v901_v9 }
  0xac   :  { %2619 = vmatpush1.msk.msra.mxu0 %vm133_vm1, %v900_v8  ;;  %v1378_v10 = vpop.permute.xlu0 %1377 }
  0xad   :  { %2620 = vmatmul.mubr.msk.f32.vlgmr.msra.gmra.mrb[2].mxu0 %vm129_vm2, %v2611_v58  ;;  %v1380_v11 = vpop.permute.xlu1 %1379  ;;  %2622 = vmatprep.subr.msk.mxu0 %vm133_vm1, %v2816_v3 }
  0xae   :  { %2623 = vmatpush1.msk.msra.mxu0 %vm133_vm1, %v2806_v0  ;;  %1217 = vmatprep.mubr.f32.mxu0 %v2752_v2  ;;  %v1391_v3 = vsel %vm1389_vm6, %v1378_v10, %v1380_v11 }
  0xaf   :  { %2628 = vmatprep.subr.msk.mxu0 %vm133_vm1, %v2838_v7 }
  0xb0   :  { %v1376_v5 = vpop.permute.xlu0 %1375 }
  0xb1   :  { %2624 = vmatmul.mubr.msk.f32.vlgmr.msra.gmra.mrb[0].mxu0 %vm129_vm2, %v2621_v4  ;;  %v1382_v12 = vpop.permute.xlu1 %1381  ;;  %2627 = vmatmul.mubr.msk.f32.vlgmr.msra.gmra.mrb[2].mxu1 %vm129_vm2, %v2621_v4  ;;  %v1390_v0 = vsel %vm1389_vm6, %v1376_v5, %v1378_v10 }
  0xb2   :  { %2629 = vmatpush1.msk.msra.mxu0 %vm133_vm1, %v2832_v6  ;;  %1359 = vmatprep.mubr.f32.mxu0 %v2752_v2  ;;  %v2631_v6 = vld [vmem:[%s3140_s4 + $0x28] sm:$0xff]  ;;  %v1392_v15 = vsel %vm1389_vm6, %v1380_v11, %v1382_v12 }
  0xb3   :  { %2632 = vmatprep.subr.msk.mxu0 %vm133_vm1, %v1391_v3  ;;  %1546 = vmatprep.mubr.f32.mxu1 %v2752_v2 }
  0xb4   :  { %v1384_v7 = vpop.permute.xlu0 %1383 }
  0xb5   :  { %2630 = vmatmul.mubr.msk.f32.vlgmr.msra.gmra.mrb[2].mxu0 %vm129_vm2, %v2621_v4  ;;  %v1386_v13 = vpop.permute.xlu1 %1385  ;;  %v1393_v14 = vsel %vm1389_vm6, %v1382_v12, %v1384_v7 }
  0xb6   :  { %2633 = vmatpush1.msk.msra.mxu0 %vm133_vm1, %v1390_v0  ;;  %1475 = vmatprep.mubr.f32.mxu0 %v2752_v2  ;;  %v1394_v19 = vsel %vm1389_vm6, %v1384_v7, %v1386_v13 }
  0xb7   :  { %2635 = vmatprep.subr.msk.mxu1 %vm133_vm1, %v1393_v14 }
  0xb8   :  { %2636 = vmatpush1.msk.msra.mxu1 %vm133_vm1, %v1392_v15  ;;  %v1388_v16 = vpop.permute.xlu0 %1387 }
  0xb9   :  { %v1635_v17 = vpop.permute.xlu1 %1634  ;;  %2634 = vmatmul.mubr.msk.f32.vlgmr.msra.gmra.mrb[0].mxu0 %vm129_vm2, %v2631_v6  ;;  %2637 = vmatmul.mubr.msk.f32.vlgmr.msra.gmra.mrb[2].mxu1 %vm129_vm2, %v2631_v6  ;;  %v1395_v18 = vsel %vm1389_vm6, %v1386_v13, %v1388_v16  ;;  %v2762_v16 = vmov 1966171168  }
  0xba   :  { %1617 = vmatprep.mubr.f32.mxu0 %v2752_v2  ;;  %1803 = vmatprep.mubr.f32.mxu1 %v2752_v2 }
  0xbb   :  { %2638 = vmatprep.subr.msk.mxu0 %vm133_vm1, %v1395_v18 }
  0xbc   :  { %2639 = vmatpush1.msk.msra.mxu0 %vm133_vm1, %v1394_v19  ;;  %v1637_v20 = vpop.permute.xlu0 %1636 }
  0xbd   :  { %v1633_v21 = vpop.permute.xlu1 %1632  ;;  %2640 = vmatmul.mubr.msk.f32.vlgmr.msra.gmra.mrb[2].mxu0 %vm129_vm2, %v2631_v6  ;;  %v1648_v22 = vsel %vm1646_vm7, %v1635_v17, %v1637_v20 }
  0xbe   :  { %v1647_v23 = vsel %vm1646_vm7, %v1633_v21, %v1635_v17  ;;  %1732 = vmatprep.mubr.f32.mxu0 %v2752_v2  ;;  %2642 = vmatprep.subr.msk.mxu0 %vm133_vm1, %v1648_v22  ;;  %v3087_v17 = vunpack.c.l.s4 %v2762_v16 }
  0xbf   :  { %2643 = vmatpush1.msk.msra.mxu0 %vm133_vm1, %v1647_v23 }
  0xc0   :  { %v1639_v25 = vpop.permute.xlu0 %1638 }
  0xc1   :  { %v1641_v26 = vpop.permute.xlu1 %1640  ;;  %2644 = vmatmul.mubr.msk.f32.vlgmr.msra.gmra.mrb[0].mxu0 %vm129_vm2, %v2641_v24  ;;  %v1649_v27 = vsel %vm1646_vm7, %v1637_v20, %v1639_v25 }
  0xc2   :  { %v1650_v28 = vsel %vm1646_vm7, %v1639_v25, %v1641_v26  ;;  %1874 = vmatprep.mubr.f32.mxu0 %v2752_v2 }
  0xc3   :  { %2645 = vmatprep.subr.msk.mxu1 %vm133_vm1, %v1650_v28  ;;  %v2521_v28 = vlaneseq }
  0xc4   :  { %2646 = vmatpush1.msk.msra.mxu1 %vm133_vm1, %v1649_v27  ;;  %v1643_v29 = vpop.permute.xlu0 %1642 }
  0xc5   :  { %v1645_v30 = vpop.permute.xlu1 %1644  ;;  %2647 = vmatmul.mubr.msk.f32.vlgmr.msra.gmra.mrb[2].mxu1 %vm129_vm2, %v2641_v24  ;;  %v1651_v31 = vsel %vm1646_vm7, %v1641_v26, %v1643_v29  ;;  %vm2558_vm10 = vcmp.lt.s32.totalorder %v2521_v28, 768 }
  0xc6   :  { %v1652_v32 = vsel %vm1646_vm7, %v1643_v29, %v1645_v30  ;;  %2060 = vmatprep.mubr.f32.mxu1 %v2752_v2 }
  0xc7   :  { %2648 = vmatprep.subr.msk.mxu0 %vm133_vm1, %v1652_v32 }
  0xc8   :  { %2649 = vmatpush1.msk.msra.mxu0 %vm133_vm1, %v1651_v31  ;;  %v1892_v33 = vpop.permute.xlu0 %1891 }
  0xc9   :  { %v1894_v34 = vpop.permute.xlu1 %1893  ;;  %2650 = vmatmul.mubr.msk.f32.vlgmr.msra.gmra.mrb[2].mxu0 %vm129_vm2, %v2641_v24 }
  0xca   :  { %v1905_v35 = vsel %vm1903_vm8, %v1892_v33, %v1894_v34  ;;  %1989 = vmatprep.mubr.f32.mxu0 %v2752_v2 }
  0xcb   :  { %2652 = vmatprep.subr.msk.mxu0 %vm133_vm1, %v1905_v35 }
  0xcc   :  { %v1890_v36 = vpop.permute.xlu0 %1889 }
  0xcd   :  { %v1896_v37 = vpop.permute.xlu1 %1895  ;;  %v1904_v39 = vsel %vm1903_vm8, %v1890_v36, %v1892_v33 }
  0xce   :  { %2653 = vmatpush1.msk.msra.mxu0 %vm133_vm1, %v1904_v39  ;;  %v1906_v43 = vsel %vm1903_vm8, %v1894_v34, %v1896_v37 }
  0xcf   :  { %2654 = vmatmul.mubr.msk.f32.vlgmr.msra.gmra.mrb[0].mxu0 %vm129_vm2, %v2651_v38 }
  0xd0   :  { %v1898_v40 = vpop.permute.xlu0 %1897  ;;  %2131 = vmatprep.mubr.f32.mxu0 %v2752_v2 }
  0xd1   :  { %v1900_v41 = vpop.permute.xlu1 %1899  ;;  %v1907_v42 = vsel %vm1903_vm8, %v1896_v37, %v1898_v40 }
  0xd2   :  { %2655 = vmatprep.subr.msk.mxu1 %vm133_vm1, %v1907_v42  ;;  %v1908_v47 = vsel %vm1903_vm8, %v1898_v40, %v1900_v41 }
  0xd3   :  { %2656 = vmatpush1.msk.msra.mxu1 %vm133_vm1, %v1906_v43 }
  0xd4   :  { %v1902_v44 = vpop.permute.xlu0 %1901  ;;  %2657 = vmatmul.mubr.msk.f32.vlgmr.msra.gmra.mrb[2].mxu1 %vm129_vm2, %v2651_v38 }
  0xd5   :  { %v2149_v45 = vpop.permute.xlu1 %2148  ;;  %v1909_v46 = vsel %vm1903_vm8, %v1900_v41, %v1902_v44  ;;  %2317 = vmatprep.mubr.f32.mxu1 %v2752_v2  ;;  %v2520_v41 = vunpack.c.0.s8 %v3087_v17 }
  0xd6   :  { %2658 = vmatprep.subr.msk.mxu0 %vm133_vm1, %v1909_v46 }
  0xd7   :  { %2659 = vmatpush1.msk.msra.mxu0 %vm133_vm1, %v1908_v47 }
  0xd8   :  { %v2151_v48 = vpop.permute.xlu0 %2150  ;;  %2660 = vmatmul.mubr.msk.f32.vlgmr.msra.gmra.mrb[2].mxu0 %vm129_vm2, %v2651_v38 }
  0xd9   :  { %v2147_v49 = vpop.permute.xlu1 %2146  ;;  %v2162_v50 = vsel %vm2160_vm9, %v2149_v45, %v2151_v48  ;;  %2246 = vmatprep.mubr.f32.mxu0 %v2752_v2 }
  0xda   :  { %v2161_v51 = vsel %vm2160_vm9, %v2147_v49, %v2149_v45  ;;  %2662 = vmatprep.subr.msk.mxu0 %vm133_vm1, %v2162_v50 }
  0xdb   :  { %2663 = vmatpush1.msk.msra.mxu0 %vm133_vm1, %v2161_v51 }
  0xdc   :  { %v2153_v53 = vpop.permute.xlu0 %2152  ;;  %2664 = vmatmul.mubr.msk.f32.vlgmr.msra.gmra.mrb[0].mxu0 %vm129_vm2, %v2661_v52 }
  0xdd   :  { %v2155_v54 = vpop.permute.xlu1 %2154  ;;  %v2163_v55 = vsel %vm2160_vm9, %v2151_v48, %v2153_v53  ;;  %2388 = vmatprep.mubr.f32.mxu0 %v2752_v2 }
  0xde   :  { %v2164_v56 = vsel %vm2160_vm9, %v2153_v53, %v2155_v54 }
  0xdf   :  { %2665 = vmatprep.subr.msk.mxu1 %vm133_vm1, %v2164_v56 }
  0xe0   :  { %2666 = vmatpush1.msk.msra.mxu1 %vm133_vm1, %v2163_v55  ;;  %v2157_v57 = vpop.permute.xlu0 %2156 }
  0xe1   :  { %2667 = vmatmul.mubr.msk.f32.vlgmr.msra.gmra.mrb[2].mxu1 %vm129_vm2, %v2661_v52  ;;  %v2159_v58 = vpop.permute.xlu1 %2158  ;;  %v2165_v59 = vsel %vm2160_vm9, %v2155_v54, %v2157_v57  ;;  %v2401_v54 = vld [vmem:[%s3141_s3] sm:$0xff] }
  0xe2   :  { %v2166_v60 = vsel %vm2160_vm9, %v2157_v57, %v2159_v58 }
  0xe3   :  { %2668 = vmatprep.subr.msk.mxu0 %vm133_vm1, %v2166_v60 }
  0xe4   :  { %2669 = vmatpush1.msk.msra.mxu0 %vm133_vm1, %v2165_v59 }
  0xe5   :  { %2670 = vmatmul.mubr.msk.f32.vlgmr.msra.gmra.mrb[2].mxu0 %vm129_vm2, %v2661_v52 }
  0xf1   :  { %v104_v1 = vpop.permute.xlu0 %103 }
 0x15b   :  { %v469_v61 = vpop.f32.mrb[0].mxu1 }
 0x15c   :  { %v471_v2 = vpop.f32.mrb[1].mxu1  ;;  %v2671_v8 = vadd.f32 %v469_v61, %v104_v1 }
 0x15d   :  { %v2673_v9 = vadd.f32 %v471_v2, %v104_v1 }
 0x164   :  { %v611_v62 = vpop.f32.mrb[4].mxu1 }
 0x165   :  { %v613_v63 = vpop.f32.mrb[5].mxu1  ;;  %v2677_v20 = vadd.f32 %v611_v62, %v104_v1 }
 0x166   :  { %v2679_v47 = vadd.f32 %v613_v63, %v104_v1 }
 0x1af   :  { %v2248_v10 = vpop.f32.mrb[0].mxu0 }
 0x1b0   :  { %v3076_v11 = vadd.f32 %v2671_v8, %v2248_v10  ;;  %v2250_v4 = vpop.f32.mrb[1].mxu0 }
 0x1b1   :  { %v3078_v5 = vadd.f32 %v2673_v9, %v2250_v4 }
 0x1b2   :  { %v2419_v12 = vsub.f32 0.0, %v3076_v11  ;;  %v2455_v3 = vrot.slane %v3076_v11, 4 }
 0x1b3   :  { %v2410_v0 = vcombine.low %v3076_v11, %v3078_v5  ;;  %v2420_v7 = vsub.f32 0.0, %v3078_v5  ;;  %v2456_v13 = vrot.slane %v3078_v5, 4  ;;  %v2402_v11 = vld [vmem:[%s3141_s3 + $0x8] sm:$0xff] }
 0x1b4   :  { %v2319_v14 = vpop.f32.mrb[2].mxu1  ;;  %v2425_v6 = vmul.f32 1.442695, %v2419_v12  ;;  %v2467_v15 = vsel %vm133_vm1, %v2455_v3, 0.0 }
 0x1b5   :  { %v3089_v18 = vadd.f32 %v2319_v14, %v104_v1  ;;  %v2321_v19 = vpop.f32.mrb[3].mxu1  ;;  %v2468_v21 = vrot.slane %v2467_v15, 4  ;;  %v2427_v22 = vmul.f32 1.442695, %v2420_v7  ;;  %v2474_v23 = vsel %vm133_vm1, %v2456_v13, 0.0 }
 0x1b6   :  { %2740 = vpow2.f32 %v2425_v6  ;;  %v2475_v24 = vrot.slane %v2474_v23, 4  ;;  %v3094_v29 = vadd.f32 %v2321_v19, %v104_v1  ;;  %v2416_v4 = vsub.f32 %v2401_v54, %v2410_v0 }
 0x1b7   :  { %v2421_v25 = vsub.f32 0.0, %v3089_v18  ;;  %v2457_v26 = vrot.slane %v3089_v18, 4  ;;  %v2469_v27 = vadd.f32 %v2468_v21, %v2467_v15  ;;  %2742 = vpow2.f32 %v2427_v22 }
 0x1b8   :  { %v2390_v30 = vpop.f32.mrb[2].mxu0  ;;  %v2476_v31 = vadd.f32 %v2475_v24, %v2474_v23  ;;  %v2411_v38 = vcombine.low %v3089_v18, %v3094_v29  ;;  %v2422_v39 = vsub.f32 0.0, %v3094_v29  ;;  %v2458_v42 = vrot.slane %v3094_v29, 4 }
 0x1b9   :  { %v2429_v32 = vmul.f32 1.442695, %v2421_v25  ;;  %v2481_v33 = vsel %vm133_vm1, %v2457_v26, 0.0  ;;  %v3097_v34 = vadd.f32 %v2677_v20, %v2390_v30  ;;  %v2392_v35 = vpop.f32.mrb[3].mxu0  ;;  %v2470_v36 = vrot.slane %v2469_v27, 2 }
 0x1ba   :  { %v2482_v37 = vrot.slane %v2481_v33, 4  ;;  %v2477_v40 = vrot.slane %v2476_v31, 2  ;;  %v2431_v46 = vmul.f32 1.442695, %v2422_v39  ;;  %v2488_v49 = vsel %vm133_vm1, %v2458_v42, 0.0 }
 0x1bb   :  { %v2423_v43 = vsub.f32 0.0, %v3097_v34  ;;  %v2471_v44 = vadd.f32 %v2470_v36, %v2469_v27  ;;  %2744 = vpow2.f32 %v2429_v32  ;;  %v2459_v50 = vrot.slane %v3097_v34, 4 }
 0x1bc   :  { %v2483_v45 = vadd.f32 %v2482_v37, %v2481_v33  ;;  %v2478_v48 = vadd.f32 %v2477_v40, %v2476_v31  ;;  %2746 = vpow2.f32 %v2431_v46  ;;  %v2489_v53 = vrot.slane %v2488_v49, 4  ;;  %v2403_v40 = vld [vmem:[%s3141_s3 + $0x10] sm:$0xff] }
 0x1bd   :  { %v2472_v51 = vrot.slane %v2471_v44, 1  ;;  %v2433_v56 = vmul.f32 1.442695, %v2423_v43  ;;  %v2495_v57 = vsel %vm133_vm1, %v2459_v50, 0.0  ;;  %v2680_v58 = vadd.f32 %v2679_v47, %v2392_v35 }
 0x1be   :  { %v2484_v52 = vrot.slane %v2483_v45, 2  ;;  %v2479_v55 = vrot.slane %v2478_v48, 1  ;;  %v2490_v61 = vadd.f32 %v2489_v53, %v2488_v49  ;;  %v2496_v2 = vrot.slane %v2495_v57, 4 }
 0x1bf   :  { %v2473_v59 = vadd.f32 %v2472_v51, %v2471_v44  ;;  %v2412_v1 = vcombine.low %v3097_v34, %v2680_v58  ;;  %v2424_v8 = vsub.f32 0.0, %v2680_v58  ;;  %v2460_v9 = vrot.slane %v2680_v58, 4 }
 0x1c0   :  { %v2485_v60 = vadd.f32 %v2484_v52, %v2483_v45  ;;  %v2741_v62 = vpop.eup %2740  ;;  %v2480_v63 = vadd.f32 %v2479_v55, %v2478_v48  ;;  %v2491_v3 = vrot.slane %v2490_v61, 2  ;;  %v2497_v7 = vadd.f32 %v2496_v2, %v2495_v57 }
 0x1c1   :  { %v2743_v10 = vpop.eup %2742  ;;  %2748 = vpow2.f32 %v2433_v56  ;;  %v2435_v6 = vmul.f32 1.442695, %v2424_v8  ;;  %v2522_v15 = vshrl.u32 %v2521_v28, 7  ;;  %v2502_v18 = vsel %vm133_vm1, %v2460_v9, 0.0 }
 0x1c2   :  { %v2486_v12 = vrot.slane %v2485_v60, 1  ;;  %v2443_v13 = vcombine.high %v2741_v62, %v2743_v10  ;;  %v2515_v14 = vcombine.low %v2473_v59, %v2480_v63  ;;  %v2492_v16 = vadd.f32 %v2491_v3, %v2490_v61 }
 0x1c3   :  { %v2498_v17 = vrot.slane %v2497_v7, 2  ;;  %2750 = vpow2.f32 %v2435_v6  ;;  %v2503_v20 = vrot.slane %v2502_v18, 4  ;;  %v2523_v25 = vsub.s32 %v2520_v41, %v2522_v15 }
 0x1c4   :  { %v2449_v19 = vmul.f32 %v2443_v13, %v2416_v4  ;;  %v2487_v22 = vadd.f32 %v2486_v12, %v2485_v60  ;;  %v2493_v5 = vrot.slane %v2492_v16, 1  ;;  %v2417_v27 = vsub.f32 %v2402_v11, %v2411_v38 }
 0x1c5   :  { %v2745_v21 = vpop.eup %2744  ;;  %v2499_v0 = vadd.f32 %v2498_v17, %v2497_v7  ;;  %v2504_v23 = vadd.f32 %v2503_v20, %v2502_v18  ;;  %v2524_v35 = vrot.slane %v2515_v14, %v2523_v25  ;;  %v2418_v44 = vsub.f32 %v2403_v40, %v2412_v1 }
 0x1c6   :  { %2452 = vst [vmem:[%s3142_s6] sm:$0xff] %v2449_v19  ;;  %v2747_v24 = vpop.eup %2746  ;;  %v2494_v26 = vadd.f32 %v2493_v5, %v2492_v16 }
 0x1c7   :  { %v2444_v29 = vcombine.high %v2745_v21, %v2747_v24  ;;  %v2500_v30 = vrot.slane %v2499_v0, 1  ;;  %v2505_v31 = vrot.slane %v2504_v23, 2 }
 0x1c8   :  { %v2516_v32 = vcombine.low %v2487_v22, %v2494_v26 }
 0x1c9   :  { %v2450_v33 = vmul.f32 %v2444_v29, %v2417_v27  ;;  %v2506_v34 = vadd.f32 %v2505_v31, %v2504_v23  ;;  %v2501_v39 = vadd.f32 %v2500_v30, %v2499_v0 }
 0x1ca   :  { %v2531_v36 = vrot.slane %v2516_v32, %v2523_v25 }
 0x1cb   :  { %v2749_v37 = vpop.eup %2748  ;;  %2453 = vst [vmem:[%s3142_s6 + $0x8] sm:$0xff] %v2450_v33  ;;  %v2507_v41 = vrot.slane %v2506_v34, 1 }
 0x1cc   :  { %v2539_v38 = vcombine.low %v2524_v35, %v2531_v36 }
 0x1cd   :  { %v2751_v42 = vpop.eup %2750  ;;  %v2508_v43 = vadd.f32 %v2507_v41, %v2506_v34 }
 0x1ce   :  { %v2445_v45 = vcombine.high %v2749_v37, %v2751_v42  ;;  %v2546_v49 = vrot.slane %v2539_v38, %v2523_v25 }
 0x1cf   :  { %v2517_v46 = vcombine.low %v2501_v39, %v2508_v43 }
 0x1d0   :  { %v2451_v47 = vmul.f32 %v2445_v45, %v2418_v44 }
 0x1d1   :  { %v2538_v48 = vrot.slane %v2517_v46, %v2523_v25 }
 0x1d2   :  { %2454 = vst [vmem:[%s3142_s6 + $0x10] sm:$0xff] %v2451_v47 }
 0x1d3   :  { %v2553_v50 = vrot.slane %v2538_v48, %v2523_v25 }
 0x1d5   :  { %v2554_v51 = vcombine.low %v2546_v49, %v2553_v50 }
 0x1d7   :  { %2560 = vst.msk [vmem:[%s3143_s7] sm:$0x3f] %vm2558_vm10, %v2554_v51 }

</bundles_post_ra>
